<compile_context>
chip_gen: v7x
topology: tpu7x:2x2x1
jax: 0.10.0
libtpu: 0.0.40
codegen_flags: <defaults>
</compile_context>

<pallas_src>
import functools

import numpy as np
import jax
import jax.numpy as jnp
from jax.experimental import pallas as pl
from jax.experimental.pallas import tpu as pltpu


# ----------------------------------------------------------------------------
# constants / helpers
# ----------------------------------------------------------------------------
LANE = 128
SUBLANE = 8
# M-tile width (lanes).  Small channel counts keep per-step VMEM tiny even at
# much larger TM; 512 already gives >=2 pipelined grid steps at realistic sizes
# while staying far below the v7x 32 MiB scoped-VMEM default.
TM_TARGET = 512


def _round_up(x, m):
    return ((x + m - 1) // m) * m


def _tile_m(m):
    """Pick (TM, padded M) with TM a multiple of 128 that divides padded M."""
    m128 = _round_up(max(m, 1), LANE)
    if m128 <= TM_TARGET:
        return m128, m128
    return TM_TARGET, _round_up(m, TM_TARGET)


# ----------------------------------------------------------------------------
# Pallas kernels
# ----------------------------------------------------------------------------
def _conv_mm_kernel(p_ref, w_ref, b_ref, o_ref, *, relu):
    """out[Cp, TM] = act(W[g] @ P + b[g]).

    Transposed formulation: M on lanes -> dense loads/stores.  bf16 operands,
    f32 accumulate (MXU), bias + ReLU in f32, bf16 store.
    Grid = (group, m_tile); weights/bias blocks are selected per group.
    """
    acc = jnp.dot(w_ref[0], p_ref[...], preferred_element_type=jnp.float32)
    acc = acc + b_ref[0]
    if relu:
        acc = jnp.maximum(acc, 0.0)
    o_ref[...] = acc.astype(o_ref.dtype)


def _conv_mm_head_kernel(p_ref, w_ref, b_ref, hw_ref, hb_ref, h_ref):
    """Fused:  y = relu(W @ P + b);   head = Wh @ y + bh   (1x1 conv epilogue).

    Avoids a separate launch and a 1-lane-wide masked store for the Cout=1
    head conv; the head matmul runs on the f32 accumulator.
    """
    acc = jnp.dot(w_ref[...], p_ref[...], preferred_element_type=jnp.float32)
    acc = jnp.maximum(acc + b_ref[...], 0.0)
    head = jnp.dot(hw_ref[...], acc, preferred_element_type=jnp.float32)
    h_ref[...] = head + hb_ref[...]


# ----------------------------------------------------------------------------
# conv2d = im2col-T (XLA glue) + Pallas transposed matmul
# ----------------------------------------------------------------------------
def _im2colT(x, kh, kw, stride, pad):
    """x: [G, N, C, H, W] -> patchesT [G, K, M], K = C*kh*kw, M = N*Ho*Wo.

    K ordering is (c, tap) to match w.reshape(Cout, Cin*kh*kw)."""
    g, n, c, h, w = x.shape
    xp = jnp.pad(x, ((0, 0), (0, 0), (0, 0), (pad, pad), (pad, pad)))
    ho = (h + 2 * pad - kh) // stride + 1
    wo = (w + 2 * pad - kw) // stride + 1
    taps = []
    for i in range(kh):
        for j in range(kw):
            taps.append(xp[:, :, :, i:i + stride * ho:stride,
                                    j:j + stride * wo:stride])
    pt = jnp.stack(taps, axis=0)                     # [T, G, N, C, Ho, Wo]
    pt = jnp.transpose(pt, (1, 3, 0, 2, 4, 5))       # [G, C, T, N, Ho, Wo]
    pt = pt.reshape(g, c * kh * kw, n * ho * wo)     # [G, K, M]
    return pt, ho, wo


def conv2d_grouped(x, w, b, *, stride=1, pad=1, relu=True):
    """Grouped fused conv+bias+act.

    x: [G, N, Cin, H, W]   w: [G, Cout, Cin, kh, kw]   b: [G, Cout]
    -> [G, N, Cout, Ho, Wo] in bf16.  All G groups (e.g. the rgb + thermal
    encoder branches, each with its own weights) run in ONE pallas_call via a
    "group" grid axis.
    """
    gG, nN, cin, _, _ = x.shape
    _, cout, _, kh, kw = w.shape

    pt, ho, wo = _im2colT(x.astype(jnp.bfloat16), kh, kw, stride, pad)
    k = cin * kh * kw
    m = nN * ho * wo

    kp = _round_up(k, SUBLANE)
    cp = _round_up(cout, SUBLANE)
    tm, mp = _tile_m(m)

    # pad K / M, lay groups out contiguously (group-major) along M
    pt = jnp.pad(pt, ((0, 0), (0, kp - k), (0, mp - m)))
    pt = jnp.transpose(pt, (1, 0, 2)).reshape(kp, gG * mp)          # [Kp, G*Mp]

    wmat = w.reshape(gG, cout, k).astype(jnp.bfloat16)
    wmat = jnp.pad(wmat, ((0, 0), (0, cp - cout), (0, kp - k)))     # [G, Cp, Kp]
    bias = jnp.pad(b.astype(jnp.float32), ((0, 0), (0, cp - cout)))
    bias = bias[:, :, None]                                         # [G, Cp, 1]

    spg = mp // tm                                   # M-tiles per group
    out = pl.pallas_call(
        functools.partial(_conv_mm_kernel, relu=relu),
        out_shape=jax.ShapeDtypeStruct((cp, gG * mp), jnp.bfloat16),
        grid=(gG, spg),
        in_specs=[
            pl.BlockSpec((kp, tm), lambda g, i: (0, g * spg + i)),
            pl.BlockSpec((1, cp, kp), lambda g, i: (g, 0, 0)),
            pl.BlockSpec((1, cp, 1), lambda g, i: (g, 0, 0)),
        ],
        out_specs=pl.BlockSpec((cp, tm), lambda g, i: (0, g * spg + i)),
        compiler_params=pltpu.CompilerParams(
            dimension_semantics=("parallel", "parallel")),
    )(pt, wmat, bias)

    out = out.reshape(cp, gG, mp).transpose(1, 0, 2)[:, :cout, :m]
    out = out.reshape(gG, cout, nN, ho, wo).transpose(0, 2, 1, 3, 4)
    return out


def conv2d(x, w, b, *, stride=1, pad=1, relu=True):
    """Single-group convenience wrapper: NCHW -> NCHW (bf16)."""
    return conv2d_grouped(x[None], w[None], b[None],
                          stride=stride, pad=pad, relu=relu)[0]


def conv2d_with_head(x, w, b, hw, hb, *, stride=1, pad=1):
    """relu(conv(x; w, b)) immediately followed by a fused 1x1 head (hw, hb).

    Returns only the head output [N, 1, Ho, Wo] in float32."""
    nN, cin, _, _ = x.shape
    cout, _, kh, kw = w.shape
    hout = hw.shape[0]                       # = 1

    pt, ho, wo = _im2colT(x[None].astype(jnp.bfloat16), kh, kw, stride, pad)
    pt = pt[0]
    k = cin * kh * kw
    m = nN * ho * wo

    kp = _round_up(k, SUBLANE)
    cp = _round_up(cout, SUBLANE)
    chp = _round_up(hout, SUBLANE)
    tm, mp = _tile_m(m)

    pt = jnp.pad(pt, ((0, kp - k), (0, mp - m)))
    wmat = jnp.pad(w.reshape(cout, k).astype(jnp.bfloat16),
                   ((0, cp - cout), (0, kp - k)))
    bias = jnp.pad(b.astype(jnp.float32), (0, cp - cout))[:, None]
    hwm = jnp.pad(hw.reshape(hout, cout).astype(jnp.float32),
                  ((0, chp - hout), (0, cp - cout)))
    hbias = jnp.pad(hb.astype(jnp.float32), (0, chp - hout))[:, None]

    head = pl.pallas_call(
        _conv_mm_head_kernel,
        out_shape=jax.ShapeDtypeStruct((chp, mp), jnp.float32),
        grid=(mp // tm,),
        in_specs=[
            pl.BlockSpec((kp, tm), lambda i: (0, i)),
            pl.BlockSpec((cp, kp), lambda i: (0, 0)),
            pl.BlockSpec((cp, 1), lambda i: (0, 0)),
            pl.BlockSpec((chp, cp), lambda i: (0, 0)),
            pl.BlockSpec((chp, 1), lambda i: (0, 0)),
        ],
        out_specs=pl.BlockSpec((chp, tm), lambda i: (0, i)),
        compiler_params=pltpu.CompilerParams(
            dimension_semantics=("parallel",)),
    )(pt, wmat, bias, hwm, hbias)

    head = head[:hout, :m].reshape(hout, nN, ho, wo).transpose(1, 0, 2, 3)
    return head


def upsample2x(x_nchw):
    return jnp.repeat(jnp.repeat(x_nchw, 2, axis=2), 2, axis=3)


# ----------------------------------------------------------------------------
# Deterministic parameters (xavier_uniform weights, zero biases, matching
# model2._initialize_weights)
# ----------------------------------------------------------------------------
ENC_C = 8  # encoder feature channels at every scale

CHANNELS = {
    "s_in": 2 * ENC_C,   # skip sees concat(r_i, t_i)
    "s_out": ENC_C,
    "de_in": ENC_C,
    "de_in2": 2 * ENC_C,
    "de_out": 1,
}


def _xavier_conv(key, cout, cin, kh, kw):
    fan_in = cin * kh * kw
    fan_out = cout * kh * kw
    bound = float(np.sqrt(6.0 / (fan_in + fan_out)))
    w = jax.random.uniform(key, (cout, cin, kh, kw), jnp.float32, -bound, bound)
    b = jnp.zeros((cout,), jnp.float32)
    return {"w": w, "b": b}


def make_params(key):
    idx = [0]

    def nxt():
        k = jax.random.fold_in(key, idx[0])
        idx[0] += 1
        return k

    p = {}
    # Encoder: two branches (rgb, thermal), stem + 4 stride-2 stages.
    for branch in ("rgb", "th"):
        p[f"{branch}_stem"] = _xavier_conv(nxt(), ENC_C, 3, 3, 3)
        for s in range(1, 5):
            p[f"{branch}_down{s}"] = _xavier_conv(nxt(), ENC_C, ENC_C, 3, 3)
    # Skip: per-scale 1x1 fusion of concat(r_i, t_i).
    for s in range(4):
        p[f"skip{s}"] = _xavier_conv(nxt(), CHANNELS["s_out"],
                                     CHANNELS["s_in"], 1, 1)
    # Decoder: bottom refinement + upsample/concat fusion + head.
    p["dec_bot"] = _xavier_conv(nxt(), ENC_C, CHANNELS["de_in"], 3, 3)
    for s in range(3):
        p[f"dec_fuse{s}"] = _xavier_conv(nxt(), ENC_C, CHANNELS["de_in2"], 3, 3)
    p["dec_head"] = _xavier_conv(nxt(), CHANNELS["de_out"], ENC_C, 1, 1)
    return p


# ----------------------------------------------------------------------------
# model2 forward
# ----------------------------------------------------------------------------
def encoder(params, x, y):
    """Twin conv-pyramid encoder; both branches (separate weights) run in a
    single grouped pallas_call per stage (group axis G=2)."""
    def wb(name):
        return (jnp.stack([params[f"rgb_{name}"]["w"], params[f"th_{name}"]["w"]]),
                jnp.stack([params[f"rgb_{name}"]["b"], params[f"th_{name}"]["b"]]))

    f = jnp.stack([x, y], axis=0)                    # [2, N, 3, H, W]
    w, b = wb("stem")
    f = conv2d_grouped(f, w, b, stride=1, pad=1, relu=True)
    r_feats, t_feats = [f[0]], [f[1]]
    for s in range(1, 5):
        w, b = wb(f"down{s}")
        f = conv2d_grouped(f, w, b, stride=2, pad=1, relu=True)
        r_feats.append(f[0])
        t_feats.append(f[1])
    return r_feats, t_feats                          # [full, /2, /4, /8, /16]


def forward(params, x_nchw, y_nchw):
    # Encoder (r0..r4, t0..t4)
    r, t = encoder(params, x_nchw, y_nchw)

    # Skip: per-scale concat(r_i, t_i) along channels + 1x1 conv + ReLU
    outs = []
    for s in range(4):
        cat = jnp.concatenate([r[s + 1], t[s + 1]], axis=1)
        outs.append(conv2d(cat, params[f"skip{s}"]["w"], params[f"skip{s}"]["b"],
                           stride=1, pad=0, relu=True))
    out0, out1, out2, out3 = outs                    # scales /2, /4, /8, /16

    # Decoder: top-down upsample + concat fusion
    d = conv2d(out3, params["dec_bot"]["w"], params["dec_bot"]["b"],
               stride=1, pad=1, relu=True)
    for s, skip_feat in enumerate((out2, out1)):
        d = upsample2x(d)
        d = jnp.concatenate([d, skip_feat], axis=1)
        d = conv2d(d, params[f"dec_fuse{s}"]["w"], params[f"dec_fuse{s}"]["b"],
                   stride=1, pad=1, relu=True)
    # Final fuse stage: the Cout=1 1x1 head commutes with the trailing
    # nearest-neighbour 2x upsample, so it is fused into the conv kernel as an
    # epilogue and the upsample runs on the 1-channel result.
    d = upsample2x(d)
    d = jnp.concatenate([d, out0], axis=1)
    head = conv2d_with_head(d, params["dec_fuse2"]["w"], params["dec_fuse2"]["b"],
                            params["dec_head"]["w"], params["dec_head"]["b"],
                            stride=1, pad=1)
    out = upsample2x(head)                           # /2 -> full resolution
    return out                                       # [N, 1, H, W] float32


# ----------------------------------------------------------------------------
if __name__ == "__main__":
    key = jax.random.PRNGKey(0)
    params = make_params(key)

    kx, ky = jax.random.split(jax.random.fold_in(key, 1000))
    N, C, H, W = 2, 3, 16, 16
    x = jax.random.normal(kx, (N, C, H, W), jnp.float32)
    y = jax.random.normal(ky, (N, C, H, W), jnp.float32)

    fwd = jax.jit(functools.partial(forward, params))
    out = fwd(x, y)
    jax.block_until_ready(out)

    assert out.shape == (N, 1, H, W), out.shape
    print("KERNEL_OK")
</pallas_src>

<mosaic_0001>
module attributes {stable_mosaic.version = 11 : i64} {
  func.func @_conv_mm_kernel(%arg0: i32, %arg1: i32, %arg2: memref<32x512xbf16, #tpu.memory_space<vmem>>, %arg3: memref<1x8x32xbf16, #tpu.memory_space<vmem>>, %arg4: memref<1x8x1xf32, #tpu.memory_space<vmem>>, %arg5: memref<8x512xbf16, #tpu.memory_space<vmem>>) attributes {dimension_semantics = [#tpu.dimension_semantics<parallel>, #tpu.dimension_semantics<parallel>], iteration_bounds = array<i64: 2, 1>, scalar_prefetch = 0 : i64, scratch_operands = 0 : i64, tpu.core_type = #tpu.core_type<tc>, window_params = [{transform_indices = @transform_0, window_bounds = array<i64: 32, 512>}, {transform_indices = @transform_1, window_bounds = array<i64: 1, 8, 32>}, {transform_indices = @transform_2, window_bounds = array<i64: 1, 8, 1>}, {transform_indices = @transform_3, window_bounds = array<i64: 8, 512>}]} {
    %c0 = arith.constant 0 : index
    %c0_0 = arith.constant 0 : index
    %c0_1 = arith.constant 0 : index
    %0 = vector.load %arg3[%c0, %c0_0, %c0_1] : memref<1x8x32xbf16, #tpu.memory_space<vmem>>, vector<1x8x32xbf16>
    %1 = vector.shape_cast %0 : vector<1x8x32xbf16> to vector<8x32xbf16>
    %c0_2 = arith.constant 0 : index
    %c0_3 = arith.constant 0 : index
    %2 = vector.load %arg2[%c0_2, %c0_3] : memref<32x512xbf16, #tpu.memory_space<vmem>>, vector<32x512xbf16>
    %cst = arith.constant dense<0.000000e+00> : vector<8x512xf32>
    %3 = tpu.matmul %1, %2, %cst {dimension_numbers = #tpu.dot_dimension_numbers<[1], [0], [0], [1], [0, 0, 1, 1], [], []>} : vector<8x32xbf16>, vector<32x512xbf16>, vector<8x512xf32> -> vector<8x512xf32>
    %c0_4 = arith.constant 0 : index
    %c0_5 = arith.constant 0 : index
    %c0_6 = arith.constant 0 : index
    %4 = vector.load %arg4[%c0_4, %c0_5, %c0_6] : memref<1x8x1xf32, #tpu.memory_space<vmem>>, vector<1x8x1xf32>
    %5 = vector.shape_cast %4 : vector<1x8x1xf32> to vector<8x1xf32>
    %6 = vector.broadcast %5 : vector<8x1xf32> to vector<8x512xf32>
    %7 = arith.addf %3, %6 : vector<8x512xf32>
    %cst_7 = arith.constant 0.000000e+00 : f32
    %8 = vector.broadcast %cst_7 : f32 to vector<8x512xf32>
    %9 = arith.maximumf %7, %8 : vector<8x512xf32>
    %10 = arith.truncf %9 : vector<8x512xf32> to vector<8x512xbf16>
    %c0_8 = arith.constant 0 : index
    %c0_9 = arith.constant 0 : index
    %11 = vector.load %arg5[%c0_8, %c0_9] : memref<8x512xbf16, #tpu.memory_space<vmem>>, vector<8x512xbf16>
    tpu.vector_store %arg5[%c0_8, %c0_9], %10 {strides = array<i32>} : memref<8x512xbf16, #tpu.memory_space<vmem>>, vector<8x512xbf16>,
    return
  }
  func.func @transform_0(%arg0: i32, %arg1: i32) -> (i32, i32) {
    %c1_i32 = arith.constant 1 : i32
    %0 = arith.muli %arg0, %c1_i32 : i32
    %1 = arith.addi %0, %arg1 : i32
    %c0_i32 = arith.constant 0 : i32
    %c0_i32_0 = arith.constant 0 : i32
    return %c0_i32, %1 : i32, i32
  }
  func.func @transform_1(%arg0: i32, %arg1: i32) -> (i32, i32, i32) {
    %c0_i32 = arith.constant 0 : i32
    %c0_i32_0 = arith.constant 0 : i32
    %c0_i32_1 = arith.constant 0 : i32
    return %arg0, %c0_i32, %c0_i32_0 : i32, i32, i32
  }
  func.func @transform_2(%arg0: i32, %arg1: i32) -> (i32, i32, i32) {
    %c0_i32 = arith.constant 0 : i32
    %c0_i32_0 = arith.constant 0 : i32
    %c0_i32_1 = arith.constant 0 : i32
    return %arg0, %c0_i32, %c0_i32_0 : i32, i32, i32
  }
  func.func @transform_3(%arg0: i32, %arg1: i32) -> (i32, i32) {
    %c1_i32 = arith.constant 1 : i32
    %0 = arith.muli %arg0, %c1_i32 : i32
    %1 = arith.addi %0, %arg1 : i32
    %c0_i32 = arith.constant 0 : i32
    %c0_i32_0 = arith.constant 0 : i32
    return %c0_i32, %1 : i32, i32
  }
}

module attributes {stable_mosaic.version = 11 : i64} {
  func.func @_conv_mm_kernel(%arg0: i32, %arg1: i32, %arg2: memref<72x128xbf16, #tpu.memory_space<vmem>>, %arg3: memref<1x8x72xbf16, #tpu.memory_space<vmem>>, %arg4: memref<1x8x1xf32, #tpu.memory_space<vmem>>, %arg5: memref<8x128xbf16, #tpu.memory_space<vmem>>) attributes {dimension_semantics = [#tpu.dimension_semantics<parallel>, #tpu.dimension_semantics<parallel>], iteration_bounds = array<i64: 2, 1>, scalar_prefetch = 0 : i64, scratch_operands = 0 : i64, tpu.core_type = #tpu.core_type<tc>, window_params = [{transform_indices = @transform_0, window_bounds = array<i64: 72, 128>}, {transform_indices = @transform_1, window_bounds = array<i64: 1, 8, 72>}, {transform_indices = @transform_2, window_bounds = array<i64: 1, 8, 1>}, {transform_indices = @transform_3, window_bounds = array<i64: 8, 128>}]} {
    %c0 = arith.constant 0 : index
    %c0_0 = arith.constant 0 : index
    %c0_1 = arith.constant 0 : index
    %0 = vector.load %arg3[%c0, %c0_0, %c0_1] : memref<1x8x72xbf16, #tpu.memory_space<vmem>>, vector<1x8x72xbf16>
    %1 = vector.shape_cast %0 : vector<1x8x72xbf16> to vector<8x72xbf16>
    %c0_2 = arith.constant 0 : index
    %c0_3 = arith.constant 0 : index
    %2 = vector.load %arg2[%c0_2, %c0_3] : memref<72x128xbf16, #tpu.memory_space<vmem>>, vector<72x128xbf16>
    %cst = arith.constant dense<0.000000e+00> : vector<8x128xf32>
    %3 = tpu.matmul %1, %2, %cst {dimension_numbers = #tpu.dot_dimension_numbers<[1], [0], [0], [1], [0, 0, 1, 1], [], []>} : vector<8x72xbf16>, vector<72x128xbf16>, vector<8x128xf32> -> vector<8x128xf32>
    %c0_4 = arith.constant 0 : index
    %c0_5 = arith.constant 0 : index
    %c0_6 = arith.constant 0 : index
    %4 = vector.load %arg4[%c0_4, %c0_5, %c0_6] : memref<1x8x1xf32, #tpu.memory_space<vmem>>, vector<1x8x1xf32>
    %5 = vector.shape_cast %4 : vector<1x8x1xf32> to vector<8x1xf32>
    %6 = vector.broadcast %5 : vector<8x1xf32> to vector<8x128xf32>
    %7 = arith.addf %3, %6 : vector<8x128xf32>
    %cst_7 = arith.constant 0.000000e+00 : f32
    %8 = vector.broadcast %cst_7 : f32 to vector<8x128xf32>
    %9 = arith.maximumf %7, %8 : vector<8x128xf32>
    %10 = arith.truncf %9 : vector<8x128xf32> to vector<8x128xbf16>
    %c0_8 = arith.constant 0 : index
    %c0_9 = arith.constant 0 : index
    %11 = vector.load %arg5[%c0_8, %c0_9] : memref<8x128xbf16, #tpu.memory_space<vmem>>, vector<8x128xbf16>
    tpu.vector_store %arg5[%c0_8, %c0_9], %10 {strides = array<i32>} : memref<8x128xbf16, #tpu.memory_space<vmem>>, vector<8x128xbf16>,
    return
  }
  func.func @transform_0(%arg0: i32, %arg1: i32) -> (i32, i32) {
    %c1_i32 = arith.constant 1 : i32
    %0 = arith.muli %arg0, %c1_i32 : i32
    %1 = arith.addi %0, %arg1 : i32
    %c0_i32 = arith.constant 0 : i32
    %c0_i32_0 = arith.constant 0 : i32
    return %c0_i32, %1 : i32, i32
  }
  func.func @transform_1(%arg0: i32, %arg1: i32) -> (i32, i32, i32) {
    %c0_i32 = arith.constant 0 : i32
    %c0_i32_0 = arith.constant 0 : i32
    %c0_i32_1 = arith.constant 0 : i32
    return %arg0, %c0_i32, %c0_i32_0 : i32, i32, i32
  }
  func.func @transform_2(%arg0: i32, %arg1: i32) -> (i32, i32, i32) {
    %c0_i32 = arith.constant 0 : i32
    %c0_i32_0 = arith.constant 0 : i32
    %c0_i32_1 = arith.constant 0 : i32
    return %arg0, %c0_i32, %c0_i32_0 : i32, i32, i32
  }
  func.func @transform_3(%arg0: i32, %arg1: i32) -> (i32, i32) {
    %c1_i32 = arith.constant 1 : i32
    %0 = arith.muli %arg0, %c1_i32 : i32
    %1 = arith.addi %0, %arg1 : i32
    %c0_i32 = arith.constant 0 : i32
    %c0_i32_0 = arith.constant 0 : i32
    return %c0_i32, %1 : i32, i32
  }
}

module attributes {stable_mosaic.version = 11 : i64} {
  func.func @_conv_mm_kernel(%arg0: i32, %arg1: i32, %arg2: memref<16x128xbf16, #tpu.memory_space<vmem>>, %arg3: memref<1x8x16xbf16, #tpu.memory_space<vmem>>, %arg4: memref<1x8x1xf32, #tpu.memory_space<vmem>>, %arg5: memref<8x128xbf16, #tpu.memory_space<vmem>>) attributes {dimension_semantics = [#tpu.dimension_semantics<parallel>, #tpu.dimension_semantics<parallel>], iteration_bounds = array<i64: 1, 1>, scalar_prefetch = 0 : i64, scratch_operands = 0 : i64, tpu.core_type = #tpu.core_type<tc>, window_params = [{transform_indices = @transform_0, window_bounds = array<i64: 16, 128>}, {transform_indices = @transform_1, window_bounds = array<i64: 1, 8, 16>}, {transform_indices = @transform_2, window_bounds = array<i64: 1, 8, 1>}, {transform_indices = @transform_3, window_bounds = array<i64: 8, 128>}]} {
    %c0 = arith.constant 0 : index
    %c0_0 = arith.constant 0 : index
    %c0_1 = arith.constant 0 : index
    %0 = vector.load %arg3[%c0, %c0_0, %c0_1] : memref<1x8x16xbf16, #tpu.memory_space<vmem>>, vector<1x8x16xbf16>
    %1 = vector.shape_cast %0 : vector<1x8x16xbf16> to vector<8x16xbf16>
    %c0_2 = arith.constant 0 : index
    %c0_3 = arith.constant 0 : index
    %2 = vector.load %arg2[%c0_2, %c0_3] : memref<16x128xbf16, #tpu.memory_space<vmem>>, vector<16x128xbf16>
    %cst = arith.constant dense<0.000000e+00> : vector<8x128xf32>
    %3 = tpu.matmul %1, %2, %cst {dimension_numbers = #tpu.dot_dimension_numbers<[1], [0], [0], [1], [0, 0, 1, 1], [], []>} : vector<8x16xbf16>, vector<16x128xbf16>, vector<8x128xf32> -> vector<8x128xf32>
    %c0_4 = arith.constant 0 : index
    %c0_5 = arith.constant 0 : index
    %c0_6 = arith.constant 0 : index
    %4 = vector.load %arg4[%c0_4, %c0_5, %c0_6] : memref<1x8x1xf32, #tpu.memory_space<vmem>>, vector<1x8x1xf32>
    %5 = vector.shape_cast %4 : vector<1x8x1xf32> to vector<8x1xf32>
    %6 = vector.broadcast %5 : vector<8x1xf32> to vector<8x128xf32>
    %7 = arith.addf %3, %6 : vector<8x128xf32>
    %cst_7 = arith.constant 0.000000e+00 : f32
    %8 = vector.broadcast %cst_7 : f32 to vector<8x128xf32>
    %9 = arith.maximumf %7, %8 : vector<8x128xf32>
    %10 = arith.truncf %9 : vector<8x128xf32> to vector<8x128xbf16>
    %c0_8 = arith.constant 0 : index
    %c0_9 = arith.constant 0 : index
    %11 = vector.load %arg5[%c0_8, %c0_9] : memref<8x128xbf16, #tpu.memory_space<vmem>>, vector<8x128xbf16>
    tpu.vector_store %arg5[%c0_8, %c0_9], %10 {strides = array<i32>} : memref<8x128xbf16, #tpu.memory_space<vmem>>, vector<8x128xbf16>,
    return
  }
  func.func @transform_0(%arg0: i32, %arg1: i32) -> (i32, i32) {
    %c1_i32 = arith.constant 1 : i32
    %0 = arith.muli %arg0, %c1_i32 : i32
    %1 = arith.addi %0, %arg1 : i32
    %c0_i32 = arith.constant 0 : i32
    %c0_i32_0 = arith.constant 0 : i32
    return %c0_i32, %1 : i32, i32
  }
  func.func @transform_1(%arg0: i32, %arg1: i32) -> (i32, i32, i32) {
    %c0_i32 = arith.constant 0 : i32
    %c0_i32_0 = arith.constant 0 : i32
    %c0_i32_1 = arith.constant 0 : i32
    return %arg0, %c0_i32, %c0_i32_0 : i32, i32, i32
  }
  func.func @transform_2(%arg0: i32, %arg1: i32) -> (i32, i32, i32) {
    %c0_i32 = arith.constant 0 : i32
    %c0_i32_0 = arith.constant 0 : i32
    %c0_i32_1 = arith.constant 0 : i32
    return %arg0, %c0_i32, %c0_i32_0 : i32, i32, i32
  }
  func.func @transform_3(%arg0: i32, %arg1: i32) -> (i32, i32) {
    %c1_i32 = arith.constant 1 : i32
    %0 = arith.muli %arg0, %c1_i32 : i32
    %1 = arith.addi %0, %arg1 : i32
    %c0_i32 = arith.constant 0 : i32
    %c0_i32_0 = arith.constant 0 : i32
    return %c0_i32, %1 : i32, i32
  }
}

module attributes {stable_mosaic.version = 11 : i64} {
  func.func @_conv_mm_kernel(%arg0: i32, %arg1: i32, %arg2: memref<72x128xbf16, #tpu.memory_space<vmem>>, %arg3: memref<1x8x72xbf16, #tpu.memory_space<vmem>>, %arg4: memref<1x8x1xf32, #tpu.memory_space<vmem>>, %arg5: memref<8x128xbf16, #tpu.memory_space<vmem>>) attributes {dimension_semantics = [#tpu.dimension_semantics<parallel>, #tpu.dimension_semantics<parallel>], iteration_bounds = array<i64: 1, 1>, scalar_prefetch = 0 : i64, scratch_operands = 0 : i64, tpu.core_type = #tpu.core_type<tc>, window_params = [{transform_indices = @transform_0, window_bounds = array<i64: 72, 128>}, {transform_indices = @transform_1, window_bounds = array<i64: 1, 8, 72>}, {transform_indices = @transform_2, window_bounds = array<i64: 1, 8, 1>}, {transform_indices = @transform_3, window_bounds = array<i64: 8, 128>}]} {
    %c0 = arith.constant 0 : index
    %c0_0 = arith.constant 0 : index
    %c0_1 = arith.constant 0 : index
    %0 = vector.load %arg3[%c0, %c0_0, %c0_1] : memref<1x8x72xbf16, #tpu.memory_space<vmem>>, vector<1x8x72xbf16>
    %1 = vector.shape_cast %0 : vector<1x8x72xbf16> to vector<8x72xbf16>
    %c0_2 = arith.constant 0 : index
    %c0_3 = arith.constant 0 : index
    %2 = vector.load %arg2[%c0_2, %c0_3] : memref<72x128xbf16, #tpu.memory_space<vmem>>, vector<72x128xbf16>
    %cst = arith.constant dense<0.000000e+00> : vector<8x128xf32>
    %3 = tpu.matmul %1, %2, %cst {dimension_numbers = #tpu.dot_dimension_numbers<[1], [0], [0], [1], [0, 0, 1, 1], [], []>} : vector<8x72xbf16>, vector<72x128xbf16>, vector<8x128xf32> -> vector<8x128xf32>
    %c0_4 = arith.constant 0 : index
    %c0_5 = arith.constant 0 : index
    %c0_6 = arith.constant 0 : index
    %4 = vector.load %arg4[%c0_4, %c0_5, %c0_6] : memref<1x8x1xf32, #tpu.memory_space<vmem>>, vector<1x8x1xf32>
    %5 = vector.shape_cast %4 : vector<1x8x1xf32> to vector<8x1xf32>
    %6 = vector.broadcast %5 : vector<8x1xf32> to vector<8x128xf32>
    %7 = arith.addf %3, %6 : vector<8x128xf32>
    %cst_7 = arith.constant 0.000000e+00 : f32
    %8 = vector.broadcast %cst_7 : f32 to vector<8x128xf32>
    %9 = arith.maximumf %7, %8 : vector<8x128xf32>
    %10 = arith.truncf %9 : vector<8x128xf32> to vector<8x128xbf16>
    %c0_8 = arith.constant 0 : index
    %c0_9 = arith.constant 0 : index
    %11 = vector.load %arg5[%c0_8, %c0_9] : memref<8x128xbf16, #tpu.memory_space<vmem>>, vector<8x128xbf16>
    tpu.vector_store %arg5[%c0_8, %c0_9], %10 {strides = array<i32>} : memref<8x128xbf16, #tpu.memory_space<vmem>>, vector<8x128xbf16>,
    return
  }
  func.func @transform_0(%arg0: i32, %arg1: i32) -> (i32, i32) {
    %c1_i32 = arith.constant 1 : i32
    %0 = arith.muli %arg0, %c1_i32 : i32
    %1 = arith.addi %0, %arg1 : i32
    %c0_i32 = arith.constant 0 : i32
    %c0_i32_0 = arith.constant 0 : i32
    return %c0_i32, %1 : i32, i32
  }
  func.func @transform_1(%arg0: i32, %arg1: i32) -> (i32, i32, i32) {
    %c0_i32 = arith.constant 0 : i32
    %c0_i32_0 = arith.constant 0 : i32
    %c0_i32_1 = arith.constant 0 : i32
    return %arg0, %c0_i32, %c0_i32_0 : i32, i32, i32
  }
  func.func @transform_2(%arg0: i32, %arg1: i32) -> (i32, i32, i32) {
    %c0_i32 = arith.constant 0 : i32
    %c0_i32_0 = arith.constant 0 : i32
    %c0_i32_1 = arith.constant 0 : i32
    return %arg0, %c0_i32, %c0_i32_0 : i32, i32, i32
  }
  func.func @transform_3(%arg0: i32, %arg1: i32) -> (i32, i32) {
    %c1_i32 = arith.constant 1 : i32
    %0 = arith.muli %arg0, %c1_i32 : i32
    %1 = arith.addi %0, %arg1 : i32
    %c0_i32 = arith.constant 0 : i32
    %c0_i32_0 = arith.constant 0 : i32
    return %c0_i32, %1 : i32, i32
  }
}

module attributes {stable_mosaic.version = 11 : i64} {
  func.func @_conv_mm_kernel(%arg0: i32, %arg1: i32, %arg2: memref<144x128xbf16, #tpu.memory_space<vmem>>, %arg3: memref<1x8x144xbf16, #tpu.memory_space<vmem>>, %arg4: memref<1x8x1xf32, #tpu.memory_space<vmem>>, %arg5: memref<8x128xbf16, #tpu.memory_space<vmem>>) attributes {dimension_semantics = [#tpu.dimension_semantics<parallel>, #tpu.dimension_semantics<parallel>], iteration_bounds = array<i64: 1, 1>, scalar_prefetch = 0 : i64, scratch_operands = 0 : i64, tpu.core_type = #tpu.core_type<tc>, window_params = [{transform_indices = @transform_0, window_bounds = array<i64: 144, 128>}, {transform_indices = @transform_1, window_bounds = array<i64: 1, 8, 144>}, {transform_indices = @transform_2, window_bounds = array<i64: 1, 8, 1>}, {transform_indices = @transform_3, window_bounds = array<i64: 8, 128>}]} {
    %c0 = arith.constant 0 : index
    %c0_0 = arith.constant 0 : index
    %c0_1 = arith.constant 0 : index
    %0 = vector.load %arg3[%c0, %c0_0, %c0_1] : memref<1x8x144xbf16, #tpu.memory_space<vmem>>, vector<1x8x144xbf16>
    %1 = vector.shape_cast %0 : vector<1x8x144xbf16> to vector<8x144xbf16>
    %c0_2 = arith.constant 0 : index
    %c0_3 = arith.constant 0 : index
    %2 = vector.load %arg2[%c0_2, %c0_3] : memref<144x128xbf16, #tpu.memory_space<vmem>>, vector<144x128xbf16>
    %cst = arith.constant dense<0.000000e+00> : vector<8x128xf32>
    %3 = tpu.matmul %1, %2, %cst {dimension_numbers = #tpu.dot_dimension_numbers<[1], [0], [0], [1], [0, 0, 1, 1], [], []>} : vector<8x144xbf16>, vector<144x128xbf16>, vector<8x128xf32> -> vector<8x128xf32>
    %c0_4 = arith.constant 0 : index
    %c0_5 = arith.constant 0 : index
    %c0_6 = arith.constant 0 : index
    %4 = vector.load %arg4[%c0_4, %c0_5, %c0_6] : memref<1x8x1xf32, #tpu.memory_space<vmem>>, vector<1x8x1xf32>
    %5 = vector.shape_cast %4 : vector<1x8x1xf32> to vector<8x1xf32>
    %6 = vector.broadcast %5 : vector<8x1xf32> to vector<8x128xf32>
    %7 = arith.addf %3, %6 : vector<8x128xf32>
    %cst_7 = arith.constant 0.000000e+00 : f32
    %8 = vector.broadcast %cst_7 : f32 to vector<8x128xf32>
    %9 = arith.maximumf %7, %8 : vector<8x128xf32>
    %10 = arith.truncf %9 : vector<8x128xf32> to vector<8x128xbf16>
    %c0_8 = arith.constant 0 : index
    %c0_9 = arith.constant 0 : index
    %11 = vector.load %arg5[%c0_8, %c0_9] : memref<8x128xbf16, #tpu.memory_space<vmem>>, vector<8x128xbf16>
    tpu.vector_store %arg5[%c0_8, %c0_9], %10 {strides = array<i32>} : memref<8x128xbf16, #tpu.memory_space<vmem>>, vector<8x128xbf16>,
    return
  }
  func.func @transform_0(%arg0: i32, %arg1: i32) -> (i32, i32) {
    %c1_i32 = arith.constant 1 : i32
    %0 = arith.muli %arg0, %c1_i32 : i32
    %1 = arith.addi %0, %arg1 : i32
    %c0_i32 = arith.constant 0 : i32
    %c0_i32_0 = arith.constant 0 : i32
    return %c0_i32, %1 : i32, i32
  }
  func.func @transform_1(%arg0: i32, %arg1: i32) -> (i32, i32, i32) {
    %c0_i32 = arith.constant 0 : i32
    %c0_i32_0 = arith.constant 0 : i32
    %c0_i32_1 = arith.constant 0 : i32
    return %arg0, %c0_i32, %c0_i32_0 : i32, i32, i32
  }
  func.func @transform_2(%arg0: i32, %arg1: i32) -> (i32, i32, i32) {
    %c0_i32 = arith.constant 0 : i32
    %c0_i32_0 = arith.constant 0 : i32
    %c0_i32_1 = arith.constant 0 : i32
    return %arg0, %c0_i32, %c0_i32_0 : i32, i32, i32
  }
  func.func @transform_3(%arg0: i32, %arg1: i32) -> (i32, i32) {
    %c1_i32 = arith.constant 1 : i32
    %0 = arith.muli %arg0, %c1_i32 : i32
    %1 = arith.addi %0, %arg1 : i32
    %c0_i32 = arith.constant 0 : i32
    %c0_i32_0 = arith.constant 0 : i32
    return %c0_i32, %1 : i32, i32
  }
}

module attributes {stable_mosaic.version = 11 : i64} {
  func.func @_conv_mm_head_kernel(%arg0: i32, %arg1: memref<144x128xbf16, #tpu.memory_space<vmem>>, %arg2: memref<8x144xbf16, #tpu.memory_space<vmem>>, %arg3: memref<8x1xf32, #tpu.memory_space<vmem>>, %arg4: memref<8x8xf32, #tpu.memory_space<vmem>>, %arg5: memref<8x1xf32, #tpu.memory_space<vmem>>, %arg6: memref<8x128xf32, #tpu.memory_space<vmem>>) attributes {dimension_semantics = [#tpu.dimension_semantics<parallel>], iteration_bounds = array<i64: 1>, scalar_prefetch = 0 : i64, scratch_operands = 0 : i64, tpu.core_type = #tpu.core_type<tc>, window_params = [{transform_indices = @transform_0, window_bounds = array<i64: 144, 128>}, {pipeline_mode = #tpu.pipeline_mode<synchronous>, transform_indices = @transform_1, window_bounds = array<i64: 8, 144>}, {pipeline_mode = #tpu.pipeline_mode<synchronous>, transform_indices = @transform_2, window_bounds = array<i64: 8, 1>}, {pipeline_mode = #tpu.pipeline_mode<synchronous>, transform_indices = @transform_3, window_bounds = array<i64: 8, 8>}, {pipeline_mode = #tpu.pipeline_mode<synchronous>, transform_indices = @transform_4, window_bounds = array<i64: 8, 1>}, {transform_indices = @transform_5, window_bounds = array<i64: 8, 128>}]} {
    %c0 = arith.constant 0 : index
    %c0_0 = arith.constant 0 : index
    %0 = vector.load %arg2[%c0, %c0_0] : memref<8x144xbf16, #tpu.memory_space<vmem>>, vector<8x144xbf16>
    %c0_1 = arith.constant 0 : index
    %c0_2 = arith.constant 0 : index
    %1 = vector.load %arg1[%c0_1, %c0_2] : memref<144x128xbf16, #tpu.memory_space<vmem>>, vector<144x128xbf16>
    %cst = arith.constant dense<0.000000e+00> : vector<8x128xf32>
    %2 = tpu.matmul %0, %1, %cst {dimension_numbers = #tpu.dot_dimension_numbers<[1], [0], [0], [1], [0, 0, 1, 1], [], []>} : vector<8x144xbf16>, vector<144x128xbf16>, vector<8x128xf32> -> vector<8x128xf32>
    %c0_3 = arith.constant 0 : index
    %c0_4 = arith.constant 0 : index
    %3 = vector.load %arg3[%c0_3, %c0_4] : memref<8x1xf32, #tpu.memory_space<vmem>>, vector<8x1xf32>
    %4 = vector.broadcast %3 : vector<8x1xf32> to vector<8x128xf32>
    %5 = arith.addf %2, %4 : vector<8x128xf32>
    %cst_5 = arith.constant 0.000000e+00 : f32
    %6 = vector.broadcast %cst_5 : f32 to vector<8x128xf32>
    %7 = arith.maximumf %5, %6 : vector<8x128xf32>
    %c0_6 = arith.constant 0 : index
    %c0_7 = arith.constant 0 : index
    %8 = vector.load %arg4[%c0_6, %c0_7] : memref<8x8xf32, #tpu.memory_space<vmem>>, vector<8x8xf32>
    %cst_8 = arith.constant dense<0.000000e+00> : vector<8x128xf32>
    %9 = tpu.matmul %8, %7, %cst_8 {dimension_numbers = #tpu.dot_dimension_numbers<[1], [0], [0], [1], [0, 0, 1, 1], [], []>} : vector<8x8xf32>, vector<8x128xf32>, vector<8x128xf32> -> vector<8x128xf32>
    %c0_9 = arith.constant 0 : index
    %c0_10 = arith.constant 0 : index
    %10 = vector.load %arg5[%c0_9, %c0_10] : memref<8x1xf32, #tpu.memory_space<vmem>>, vector<8x1xf32>
    %11 = vector.broadcast %10 : vector<8x1xf32> to vector<8x128xf32>
    %12 = arith.addf %9, %11 : vector<8x128xf32>
    %c0_11 = arith.constant 0 : index
    %c0_12 = arith.constant 0 : index
    %13 = vector.load %arg6[%c0_11, %c0_12] : memref<8x128xf32, #tpu.memory_space<vmem>>, vector<8x128xf32>
    tpu.vector_store %arg6[%c0_11, %c0_12], %12 {strides = array<i32>} : memref<8x128xf32, #tpu.memory_space<vmem>>, vector<8x128xf32>,
    return
  }
  func.func @transform_0(%arg0: i32) -> (i32, i32) {
    %c0_i32 = arith.constant 0 : i32
    %c0_i32_0 = arith.constant 0 : i32
    return %c0_i32, %arg0 : i32, i32
  }
  func.func @transform_1(%arg0: i32) -> (i32, i32) {
    %c0_i32 = arith.constant 0 : i32
    %c0_i32_0 = arith.constant 0 : i32
    %c0_i32_1 = arith.constant 0 : i32
    return %c0_i32, %c0_i32_0 : i32, i32
  }
  func.func @transform_2(%arg0: i32) -> (i32, i32) {
    %c0_i32 = arith.constant 0 : i32
    %c0_i32_0 = arith.constant 0 : i32
    %c0_i32_1 = arith.constant 0 : i32
    return %c0_i32, %c0_i32_0 : i32, i32
  }
  func.func @transform_3(%arg0: i32) -> (i32, i32) {
    %c0_i32 = arith.constant 0 : i32
    %c0_i32_0 = arith.constant 0 : i32
    %c0_i32_1 = arith.constant 0 : i32
    return %c0_i32, %c0_i32_0 : i32, i32
  }
  func.func @transform_4(%arg0: i32) -> (i32, i32) {
    %c0_i32 = arith.constant 0 : i32
    %c0_i32_0 = arith.constant 0 : i32
    %c0_i32_1 = arith.constant 0 : i32
    return %c0_i32, %c0_i32_0 : i32, i32
  }
  func.func @transform_5(%arg0: i32) -> (i32, i32) {
    %c0_i32 = arith.constant 0 : i32
    %c0_i32_0 = arith.constant 0 : i32
    return %c0_i32, %arg0 : i32, i32
  }
}

</mosaic_0001>

<bundles_post_ra>
// kernel: forward.13
= control target key start
LH: loop header
LB: loop body
LE: loop exit
PB: predicated region body
PF: predicated region fallthrough
CT: control target
= control target key end

     0   :  { %s670_s12 = smov 0   ;;  %s672_s13 = smov 0   ;;  %s743_s0 = inlined_call_operand.vmem [shape: bf16[32,1024], index: 0, kind: input, shape index: {}]   ;;  %s744_s1 = inlined_call_operand.vmem [shape: bf16[2,8,32], index: 1, kind: input, shape index: {}]   ;;  %s745_s2 = inlined_call_operand.vmem [shape: f32[2,8,1], index: 2, kind: input, shape index: {}]   ;;  %s746_s3 = inlined_call_operand.vmem [shape: bf16[8,1024], index: 3, kind: output, shape index: {}]  }
   0x1   :  { %s674_s14 = smov 0   ;;  %s676_s15 = smov 0  }
   0x2   :  { %s678_s16 = smov 0  }
   0x3 LB: > { %s25_s17 = sadd.s32 1, %s643_s15  ;;  %p41_p1 = scmp.ne.s32.totalorder %s635_s13, %s631_s12  ;;  %s647_s16 = sphi %s678_s16, %s13_s16   ;;  %s643_s15 = sphi %s676_s15, %s750_s15   ;;  %s639_s14 = sphi %s674_s14, %s749_s14   ;;  %s635_s13 = sphi %s672_s13, %s748_s13   ;;  %s631_s12 = sphi %s670_s12, %s747_s12  }
   0x4   : > { %p27_p0 = scmp.ge.s32.totalorder %s25_s17, 2  ;;  %p42_p2 = scmp.eq.s32.totalorder %s647_s16, 0 }
   0x5   : > { %s34_s19 = sadd.s32 1, %s635_s13  ;;  %p528_p5 = scmp.ge.s32.totalorder %s647_s16, 2 }
   0x6   : > { %s752_s17 = smov (%p27_p0, %s25_s17), 0  ;;  %p43_p3 = por %p42_p2, %p41_p1 }
   0x7   : > { %s31_s18 = ssub.s32 %s643_s15, %s752_s17  ;;  %147 = sbr.rel (%p528_p5) target bundleno = 22 (0x16), region = 16 }
   0x8   : > { %p32_p4 = scmp.eq.s32.totalorder %s31_s18, 0 }
   0xa   : > { %s705_s20 = scalar_select %p32_p4, %s635_s13, %s34_s19  }
   0xe   : > { %150 = sbr.rel (!%p43_p3) target bundleno = 22 (0x16), region = 20  ;;  %s152_s21 = sand.u32 (%p43_p3), 1, %s635_s13  }
   0xf   : > { %s552_s22 = sshll.u32 (%p43_p3), %s643_s15, 4  ;;  %s529_s23 = sshll.u32 (%p43_p3), %s152_s21, 6 }
  0x10   : > { %s158_s26 = scalar_lea.vmem (%p43_p3), %s743_s0, %s552_s22  ;;  %s154_s27 = scalar_lea.vmem (%p43_p3), [#allocation2], %s529_s23 }
  0x11   : > { %v171_v0 = vld [vmem:[%s158_s26] sm:$0xff] (%p43_p3)  ;;  %v173_v1 = vld [vmem:[%s158_s26 + $0x8] sm:$0xff] (%p43_p3) }
  0x12   : > { %v175_v2 = vld [vmem:[%s158_s26 + $0x20] sm:$0xff] (%p43_p3)  ;;  %172 = vst [vmem:[%s154_s27] sm:$0xff] (%p43_p3), %v171_v0  ;;  %174 = vst [vmem:[%s154_s27 + $0x8] sm:$0xff] (%p43_p3), %v173_v1  ;;  %v177_v3 = vld [vmem:[%s158_s26 + $0x28] sm:$0xff] (%p43_p3) }
  0x13   : > { %176 = vst [vmem:[%s154_s27 + $0x10] sm:$0xff] (%p43_p3), %v175_v2  ;;  %v179_v4 = vld [vmem:[%s158_s26 + $0x40] sm:$0xff] (%p43_p3)  ;;  %v181_v5 = vld [vmem:[%s158_s26 + $0x48] sm:$0xff] (%p43_p3)  ;;  %178 = vst [vmem:[%s154_s27 + $0x18] sm:$0xff] (%p43_p3), %v177_v3 }
  0x14   : > { %180 = vst [vmem:[%s154_s27 + $0x20] sm:$0xff] (%p43_p3), %v179_v4  ;;  %182 = vst [vmem:[%s154_s27 + $0x28] sm:$0xff] (%p43_p3), %v181_v5  ;;  %v183_v6 = vld [vmem:[%s158_s26 + $0x60] sm:$0xff] (%p43_p3)  ;;  %v185_v7 = vld [vmem:[%s158_s26 + $0x68] sm:$0xff] (%p43_p3) }
  0x15   : > { %184 = vst [vmem:[%s154_s27 + $0x30] sm:$0xff] %v183_v6  ;;  %186 = vst [vmem:[%s154_s27 + $0x38] sm:$0xff] %v185_v7 }
  0x16 PF: > { %p532_p6 = scmp.ge.s32.totalorder %s647_s16, 1  ;;  %p205_p7 = scmp.lt.s32.totalorder %s647_s16, 3 }
  0x18   : > { %p206_p8 = pnand %p532_p6, %p205_p7 }
  0x19   : > { %s212_s28 = sand.u32 (!%p206_p8), 1, %s631_s12   ;;  %p246_p9 = scmp.lt.s32.totalorder (!%p206_p8), %s639_s14, 1  ;;  %v649_v8 = vmov (!%p206_p8), 0   ;;  %vm318_vm0 = vcmask (!%p206_p8), 261120  }
  0x1a   : > { %209 = sbr.rel (%p206_p8) target bundleno = 259 (0x103), region = 51  ;;  %s533_s29 = sshll.u32 (!%p206_p8), %s212_s28, 6  ;;  %354 = vmatprep.mubr.bf16.mxu0 (!%p206_p8), %v649_v8  ;;  %395 = vmatprep.mubr.bf16.mxu1 (!%p206_p8), %v649_v8 }
  0x1b   : > { %596 = vset.pattern.permute.xlu0 (!%p206_p8), %v649_v8  ;;  %s214_s30 = scalar_lea.vmem (!%p206_p8), [#allocation2], %s533_s29  ;;  %s536_s18 = sshll.u32 (!%p206_p8), %s639_s14, 2 }
  0x1c   : > { %v597_v9 = vld [vmem:[%s214_s30 + $0x4] ss:$16 sps:$4 sm:$0xff] (!%p206_p8)   ;;  %v599_v10 = vld [vmem:[%s214_s30 + $0xc] ss:$16 sps:$4 sm:$0xff] (!%p206_p8)   ;;  %v601_v11 = vld [vmem:[%s214_s30] ss:$16 sps:$4 sm:$0xff] (!%p206_p8)  }
  0x1d   : > { %322 = vmatprep.subr.bf16.mxu0 (!%p206_p8), %v597_v9  ;;  %v602_v12 = vld [vmem:[%s214_s30 + $0x8] ss:$16 sps:$4 sm:$0xff] (!%p206_p8)   ;;  %363 = vmatprep.subr.bf16.mxu1 (!%p206_p8), %v599_v10  ;;  %v603_v13 = vld [vmem:[%s214_s30 + $0x24] ss:$16 sps:$4 sm:$0xff] (!%p206_p8)   ;;  %v605_v14 = vld [vmem:[%s214_s30 + $0x2c] ss:$16 sps:$4 sm:$0xff] (!%p206_p8)  }
  0x1e   : > { %323 = vmatpush1.bf16.msra.mxu0 (!%p206_p8), %v601_v11  ;;  %364 = vmatpush1.bf16.msra.mxu1 (!%p206_p8), %v602_v12  ;;  %v607_v15 = vld [vmem:[%s214_s30 + $0x20] ss:$16 sps:$4 sm:$0xff] (!%p206_p8)   ;;  %v608_v16 = vld [vmem:[%s214_s30 + $0x28] ss:$16 sps:$4 sm:$0xff] (!%p206_p8)   ;;  %p256_p10 = scmp.lt.s32.totalorder (!%p206_p8), %s536_s18, 7 }
  0x1f   : > { %324 = vmatprep.subr.bf16.mxu0 (!%p206_p8), %v603_v13  ;;  %365 = vmatprep.subr.bf16.mxu1 (!%p206_p8), %v605_v14 }
  0x21   : > { %s247_s4 = scalar_select %p246_p9, %s639_s14, 1 }
  0x22   : > { %325 = vmatpush1.bf16.msra.mxu0 %v607_v15  ;;  %366 = vmatpush1.bf16.msra.mxu1 %v608_v16  ;;  %s754_s18 = smov (!%p256_p10, %s536_s18), 7 }
  0x23   : > { %s534_s5 = sshll.u32 %s247_s4, 2  ;;  %s535_s6 = sshll.u32 %s247_s4, 3 }
  0x24   : > { %s253_s9 = scalar_lea.vmem %s745_s2, %s535_s6  ;;  %s249_s12 = scalar_lea.vmem %s744_s1, %s534_s5 }
  0x25   : > { %v272_v17 = vld [vmem:[%s253_s9] sm:$0xff]  ;;  %s537_s19 = sshll.u32 %s754_s18, 2 }
  0x26   : > { %275 = vperm.xlu0 %596, %v272_v17   ;;  %v263_v18 = vld [vmem:[%s249_s12] sm:$0xf]  ;;  %s259_s22 = scalar_lea.vmem %s746_s3, %s537_s19 }
  0x27   : > { %546 = vmatmul.mubr.msk.bf16.vlgmr.msra.gmra.mrb[0].mxu0 %vm318_vm0, %v263_v18  ;;  %547 = vmatmul.mubr.msk.bf16.vlgmr.msra.gmra.mrb[0].mxu1 %vm318_vm0, %v263_v18 }
  0xa5   : > { %v276_v19 = vpop.permute.xlu0 %275 }
  0xfa   : > { %v356_v20 = vpop.f32.mrb[0].mxu0  ;;  %v397_v21 = vpop.f32.mrb[0].mxu1 }
  0xfb   : > { %v357_v22 = vadd.f32 %v356_v20, %v276_v19  ;;  %v398_v23 = vadd.f32 %v397_v21, %v276_v19  ;;  %v358_v24 = vpop.f32.mrb[1].mxu0  ;;  %v399_v25 = vpop.f32.mrb[1].mxu1 }
  0xfc   : > { %v359_v26 = vadd.f32 %v358_v24, %v276_v19  ;;  %v400_v27 = vadd.f32 %v399_v25, %v276_v19  ;;  %v360_v28 = vpop.f32.mrb[2].mxu0  ;;  %v401_v29 = vpop.f32.mrb[2].mxu1 }
  0xfd   : > { %v404_v30 = vmax.f32 %v357_v22, 0.0  ;;  %v406_v31 = vmax.f32 %v398_v23, 0.0  ;;  %v361_v32 = vpop.f32.mrb[3].mxu0  ;;  %v402_v33 = vpop.f32.mrb[3].mxu1 }
  0xfe   : > { %v405_v34 = vmax.f32 %v359_v26, 0.0  ;;  %v407_v35 = vmax.f32 %v400_v27, 0.0 }
 0x100   : > { %v553_v36 = vpack.c.bf16 %v405_v34, %v404_v30  ;;  %v554_v37 = vpack.c.bf16 %v407_v35, %v406_v31 }
 0x102   : > { %424 = vst [vmem:[%s259_s22] sm:$0xff] %v553_v36  ;;  %425 = vst [vmem:[%s259_s22 + $0x8] sm:$0xff] %v554_v37 }
 0x103 PF: > { %s13_s16 = sadd.s32 1, %s647_s16   ;;  %s747_s12 = smov %s635_s13 }
 0x104   : > { %p10_p11 = scmp.ge.s32.totalorder %s13_s16, 4   ;;  %s748_s13 = smov %s705_s20 }
 0x105   : > { %s749_s14 = smov %s643_s15  ;;  %s750_s15 = smov %s752_s17 }
 0x106   :  { %12 = sbr.rel (!%p10_p11) target bundleno = 3 (0x3), region = 96 }

// kernel: forward.14
= control target key start
LH: loop header
LB: loop body
LE: loop exit
PB: predicated region body
PF: predicated region fallthrough
CT: control target
= control target key end

     0   :  { %s639_s12 = smov 0   ;;  %s641_s13 = smov 0   ;;  %s715_s0 = inlined_call_operand.vmem [shape: bf16[72,256], index: 0, kind: input, shape index: {}]   ;;  %s716_s1 = inlined_call_operand.vmem [shape: bf16[2,8,72], index: 1, kind: input, shape index: {}]   ;;  %s717_s2 = inlined_call_operand.vmem [shape: f32[2,8,1], index: 2, kind: input, shape index: {}]   ;;  %s718_s3 = inlined_call_operand.vmem [shape: bf16[8,256], index: 3, kind: output, shape index: {}]  }
   0x1   :  { %s643_s14 = smov 0   ;;  %s645_s15 = smov 0  }
   0x2   :  { %s647_s16 = smov 0  }
   0x3 LB: > { %s25_s17 = sadd.s32 1, %s610_s15  ;;  %p41_p1 = scmp.ne.s32.totalorder %s602_s13, %s598_s12  ;;  %s614_s16 = sphi %s647_s16, %s13_s16   ;;  %s610_s15 = sphi %s645_s15, %s722_s15   ;;  %s606_s14 = sphi %s643_s14, %s721_s14   ;;  %s602_s13 = sphi %s641_s13, %s720_s13   ;;  %s598_s12 = sphi %s639_s12, %s719_s12  }
   0x4   : > { %p27_p0 = scmp.ge.s32.totalorder %s25_s17, 2  ;;  %p42_p2 = scmp.eq.s32.totalorder %s614_s16, 0 }
   0x5   : > { %s34_s19 = sadd.s32 1, %s602_s13  ;;  %p491_p5 = scmp.ge.s32.totalorder %s614_s16, 2 }
   0x6   : > { %s724_s17 = smov (%p27_p0, %s25_s17), 0  ;;  %p43_p3 = por %p42_p2, %p41_p1 }
   0x7   : > { %s31_s18 = ssub.s32 %s610_s15, %s724_s17  ;;  %147 = sbr.rel (%p491_p5) target bundleno = 24 (0x18), region = 16 }
   0x8   : > { %p32_p4 = scmp.eq.s32.totalorder %s31_s18, 0 }
   0xa   : > { %s674_s20 = scalar_select %p32_p4, %s602_s13, %s34_s19  }
   0xe   : > { %150 = sbr.rel (!%p43_p3) target bundleno = 24 (0x18), region = 20  ;;  %s152_s21 = sand.u32 (%p43_p3), 1, %s602_s13  }
   0xf   : > { %s492_s22 = sshll.u32 (%p43_p3), %s610_s15, 2  ;;  %s525_s23 = smul.u32 (%p43_p3), 36, %s152_s21 }
  0x10   : > { %s157_s26 = scalar_lea.vmem (%p43_p3), %s715_s0, %s492_s22 }
  0x11   : > { %v173_v0 = vld [vmem:[%s157_s26] sm:$0xf] (%p43_p3)  ;;  %v175_v1 = vld [vmem:[%s157_s26 + $0x8] sm:$0xf] (%p43_p3)  ;;  %v177_v2 = vld [vmem:[%s157_s26 + $0x10] sm:$0xf] (%p43_p3) }
  0x12   : > { %v179_v3 = vld [vmem:[%s157_s26 + $0x18] sm:$0xf] (%p43_p3)  ;;  %v181_v4 = vld [vmem:[%s157_s26 + $0x20] sm:$0xf] (%p43_p3)  ;;  %s154_s27 = scalar_lea.vmem (%p43_p3), [#allocation2], %s525_s23 }
  0x13   : > { %174 = vst [vmem:[%s154_s27] sm:$0xf] (%p43_p3), %v173_v0  ;;  %176 = vst [vmem:[%s154_s27 + $0x4] sm:$0xf] (%p43_p3), %v175_v1  ;;  %v183_v5 = vld [vmem:[%s157_s26 + $0x28] sm:$0xf] (%p43_p3) }
  0x14   : > { %178 = vst [vmem:[%s154_s27 + $0x8] sm:$0xf] (%p43_p3), %v177_v2  ;;  %180 = vst [vmem:[%s154_s27 + $0xc] sm:$0xf] (%p43_p3), %v179_v3  ;;  %v185_v6 = vld [vmem:[%s157_s26 + $0x30] sm:$0xf] (%p43_p3) }
  0x15   : > { %182 = vst [vmem:[%s154_s27 + $0x10] sm:$0xf] %v181_v4  ;;  %v187_v7 = vld [vmem:[%s157_s26 + $0x38] sm:$0xf]  ;;  %184 = vst [vmem:[%s154_s27 + $0x14] sm:$0xf] %v183_v5 }
  0x16   : > { %186 = vst [vmem:[%s154_s27 + $0x18] sm:$0xf] %v185_v6  ;;  %188 = vst [vmem:[%s154_s27 + $0x1c] sm:$0xf] %v187_v7  ;;  %v189_v8 = vld [vmem:[%s157_s26 + $0x40] sm:$0xf] }
  0x17   : > { %190 = vst [vmem:[%s154_s27 + $0x20] sm:$0xf] %v189_v8 }
  0x18 PF: > { %p493_p6 = scmp.ge.s32.totalorder %s614_s16, 1  ;;  %p244_p7 = scmp.lt.s32.totalorder %s614_s16, 3 }
  0x1a   : > { %p245_p8 = pnand %p493_p6, %p244_p7 }
  0x1b   : > { %s251_s28 = sand.u32 (!%p245_p8), 1, %s598_s12   ;;  %p283_p9 = scmp.lt.s32.totalorder (!%p245_p8), %s606_s14, 1  ;;  %v616_v9 = vmov (!%p245_p8), 0.0   ;;  %vm617_vm0 = vmmov (!%p245_p8), 0   ;;  %v618_v10 = vmov (!%p245_p8), 0   ;;  %vm345_vm1 = vcmask (!%p245_p8), 1043456  }
  0x1c   : > { %248 = sbr.rel (%p245_p8) target bundleno = 271 (0x10f), region = 69  ;;  %511 = vmatprep.subr.bf16.mxu0 (!%p245_p8), %v616_v9  ;;  %521 = vmatprep.mubr.msk.bf16.mxu0 (!%p245_p8), %vm617_vm0, %v616_v9  ;;  %vm341_vm2 = vcmask (!%p245_p8), 588800  }
  0x1d   : > { %s526_s29 = smul.u32 (!%p245_p8), 36, %s251_s28  ;;  %570 = vset.pattern.permute.xlu0 (!%p245_p8), %v618_v10 }
  0x1f   : > { %s253_s30 = scalar_lea.vmem (!%p245_p8), [#allocation2], %s526_s29 }
  0x20   : > { %v571_v11 = vld [vmem:[%s253_s30] sm:$0xff] (!%p245_p8)   ;;  %v572_v12 = vld [vmem:[%s253_s30 + $0x8] sm:$0xff] (!%p245_p8)   ;;  %v573_v14 = vld [vmem:[%s253_s30 + $0x10] sm:$0xff] (!%p245_p8)  }
  0x21   : > { %512 = vmatpush3.bf16.msra.mxu0 (!%p245_p8), %v571_v11  ;;  %v574_v15 = vld [vmem:[%s253_s30 + $0x18] sm:$0xff] (!%p245_p8)   ;;  %v575_v16 = vld [vmem:[%s253_s30 + $0x20] ss:$0 sps:$4 sm:$0xff] (!%p245_p8)  }
  0x22   : > { %513 = vmatprep.subr.bf16.mxu0 (!%p245_p8), %v616_v9  ;;  %v347_v17 = vsel (!%p245_p8), %vm345_vm1, %v575_v16, 0 }
  0x23   : > { %s726_s14 = smov (!%p283_p9, %s606_s14), 1 }
  0x24   : > { %s495_s4 = sshll.u32 %s726_s14, 3  ;;  %s494_s8 = sshll.u32 %s726_s14, 2 }
  0x25   : > { %s290_s7 = scalar_lea.vmem %s717_s2, %s495_s4  ;;  %514 = vmatpush3.bf16.msra.mxu0 %v572_v12  ;;  %s286_s11 = scalar_lea.vmem %s716_s1, %s494_s8 }
  0x26   : > { %v308_v13 = vld [vmem:[%s290_s7] sm:$0xff]  ;;  %515 = vmatprep.subr.bf16.mxu0 %v616_v9  ;;  %s295_s18 = scalar_lea.vmem %s718_s3, %s494_s8 }
  0x27   : > { %311 = vperm.xlu0 %570, %v308_v13   ;;  %v298_v18 = vld [vmem:[%s286_s11] sm:$0xf] }
  0x29   : > { %516 = vmatpush3.bf16.msra.mxu0 %v573_v14 }
  0x2a   : > { %517 = vmatprep.subr.bf16.mxu0 %v616_v9 }
  0x2d   : > { %518 = vmatpush3.bf16.msra.mxu0 %v574_v15 }
  0x2e   : > { %519 = vmatprep.subr.bf16.mxu0 %v616_v9 }
  0x31   : > { %520 = vmatpush3.bf16.msra.mxu0 %v347_v17 }
  0x34   : > { %522 = vmatmul.mubr.msk.bf16.vlgmr.msra.gmra.mrb[0].mxu0 %vm341_vm2, %v298_v18 }
  0xa6   : > { %v312_v19 = vpop.permute.xlu0 %311 }
 0x107   : > { %v383_v20 = vpop.f32.mrb[0].mxu0 }
 0x108   : > { %v384_v21 = vadd.f32 %v383_v20, %v312_v19  ;;  %v523_v22 = vpop.f32.mrb[1].mxu0 }
 0x109   : > { %v386_v23 = vpop.f32.mrb[2].mxu0 }
 0x10a   : > { %v389_v24 = vmax.f32 %v384_v21, 0.0  ;;  %v524_v25 = vpop.f32.mrb[3].mxu0 }
 0x10c   : > { %v390_v26 = vpack.c.bf16 %v389_v24, %v389_v24 }
 0x10e   : > { %391 = vst [vmem:[%s295_s18] sm:$0xf] %v390_v26 }
 0x10f PF: > { %s13_s16 = sadd.s32 1, %s614_s16   ;;  %s719_s12 = smov %s602_s13 }
 0x110   : > { %p10_p10 = scmp.ge.s32.totalorder %s13_s16, 4   ;;  %s720_s13 = smov %s674_s20 }
 0x111   : > { %s721_s14 = smov %s610_s15  ;;  %s722_s15 = smov %s724_s17 }
 0x112   :  { %12 = sbr.rel (!%p10_p10) target bundleno = 3 (0x3), region = 114 }

// kernel: forward.21
= control target key start
LH: loop header
LB: loop body
LE: loop exit
PB: predicated region body
PF: predicated region fallthrough
CT: control target
= control target key end

     0   :  { %v149_v0 = vmov 0.0   ;;  %vm150_vm0 = vmmov 0   ;;  %v151_v2 = vmov 0   ;;  %vm58_vm1 = vcmask 130048   ;;  %s184_s0 = inlined_call_operand.vmem [shape: bf16[16,128], index: 0, kind: input, shape index: {}]   ;;  %s185_s1 = inlined_call_operand.vmem [shape: bf16[1,8,16], index: 1, kind: input, shape index: {}]   ;;  %s186_s2 = inlined_call_operand.vmem [shape: f32[1,8,1], index: 2, kind: input, shape index: {}]   ;;  %s187_s3 = inlined_call_operand.vmem [shape: bf16[8,128], index: 3, kind: output, shape index: {}]  }
   0x1   :  { %138 = vmatprep.subr.bf16.mxu0 %v149_v0  ;;  %v148_v1 = vld [vmem:[%s184_s0] sm:$0xff]   ;;  %140 = vmatprep.mubr.msk.bf16.mxu0 %vm150_vm0, %v149_v0 }
   0x2   :  { %147 = vset.pattern.permute.xlu0 %v151_v2  ;;  %v46_v3 = vld [vmem:[%s186_s2] sm:$0xff]  ;;  %139 = vmatpush3.bf16.msra.mxu0 %v148_v1 }
   0x3   :  { %v43_v4 = vld [vmem:[%s185_s1] sm:$0xf]  ;;  %49 = vperm.xlu0 %147, %v46_v3  }
   0x5   :  { %141 = vmatmul.mubr.msk.bf16.vlgmr.msra.gmra.mrb[0].mxu0 %vm58_vm1, %v43_v4 }
  0x82   :  { %v50_v5 = vpop.permute.xlu0 %49 }
  0xd8   :  { %v96_v6 = vpop.f32.mrb[0].mxu0 }
  0xd9   :  { %v97_v7 = vadd.f32 %v96_v6, %v50_v5  ;;  %v142_v8 = vpop.f32.mrb[1].mxu0 }
  0xda   :  { %v99_v9 = vpop.f32.mrb[2].mxu0 }
  0xdb   :  { %v102_v10 = vmax.f32 %v97_v7, 0.0  ;;  %v143_v11 = vpop.f32.mrb[3].mxu0 }
  0xdd   :  { %v103_v12 = vpack.c.bf16 %v102_v10, %v102_v10 }
  0xdf   :  { %104 = vst [vmem:[%s187_s3] sm:$0xf] %v103_v12 }

// kernel: forward.22
= control target key start
LH: loop header
LB: loop body
LE: loop exit
PB: predicated region body
PF: predicated region fallthrough
CT: control target
= control target key end

     0   :  { %v201_v0 = vmov 0.0   ;;  %vm202_vm0 = vmmov 0   ;;  %v203_v2 = vmov 0   ;;  %vm90_vm1 = vcmask 1043456   ;;  %s248_s0 = inlined_call_operand.vmem [shape: bf16[72,128], index: 0, kind: input, shape index: {}]   ;;  %s249_s2 = inlined_call_operand.vmem [shape: f32[1,8,1], index: 2, kind: input, shape index: {}]   ;;  %s250_s1 = inlined_call_operand.vmem [shape: bf16[1,8,72], index: 1, kind: input, shape index: {}]   ;;  %s251_s3 = inlined_call_operand.vmem [shape: bf16[8,128], index: 3, kind: output, shape index: {}]  }
   0x1   :  { %178 = vmatprep.subr.bf16.mxu0 %v201_v0  ;;  %v196_v1 = vld [vmem:[%s248_s0] sm:$0xff]   ;;  %188 = vmatprep.mubr.msk.bf16.mxu0 %vm202_vm0, %v201_v0  ;;  %v197_v3 = vld [vmem:[%s248_s0 + $0x8] sm:$0xff]   ;;  %v198_v5 = vld [vmem:[%s248_s0 + $0x10] sm:$0xff]   ;;  %vm86_vm2 = vcmask 588800  }
   0x2   :  { %195 = vset.pattern.permute.xlu0 %v203_v2  ;;  %179 = vmatpush3.bf16.msra.mxu0 %v196_v1  ;;  %v53_v4 = vld [vmem:[%s249_s2] sm:$0xff]  ;;  %v199_v6 = vld [vmem:[%s248_s0 + $0x18] sm:$0xff]  }
   0x3   :  { %180 = vmatprep.subr.bf16.mxu0 %v201_v0  ;;  %56 = vperm.xlu0 %195, %v53_v4   ;;  %v200_v7 = vld [vmem:[%s248_s0 + $0x20] ss:$0 sps:$4 sm:$0xff]  }
   0x4   :  { %v92_v8 = vsel %vm90_vm1, %v200_v7, 0  ;;  %v43_v9 = vld [vmem:[%s250_s1] sm:$0xf] }
   0x6   :  { %181 = vmatpush3.bf16.msra.mxu0 %v197_v3 }
   0x7   :  { %182 = vmatprep.subr.bf16.mxu0 %v201_v0 }
   0xa   :  { %183 = vmatpush3.bf16.msra.mxu0 %v198_v5 }
   0xb   :  { %184 = vmatprep.subr.bf16.mxu0 %v201_v0 }
   0xe   :  { %185 = vmatpush3.bf16.msra.mxu0 %v199_v6 }
   0xf   :  { %186 = vmatprep.subr.bf16.mxu0 %v201_v0 }
  0x12   :  { %187 = vmatpush3.bf16.msra.mxu0 %v92_v8 }
  0x15   :  { %189 = vmatmul.mubr.msk.bf16.vlgmr.msra.gmra.mrb[0].mxu0 %vm86_vm2, %v43_v9 }
  0x82   :  { %v57_v10 = vpop.permute.xlu0 %56 }
  0xe8   :  { %v128_v11 = vpop.f32.mrb[0].mxu0 }
  0xe9   :  { %v129_v12 = vadd.f32 %v128_v11, %v57_v10  ;;  %v190_v13 = vpop.f32.mrb[1].mxu0 }
  0xea   :  { %v131_v14 = vpop.f32.mrb[2].mxu0 }
  0xeb   :  { %v134_v15 = vmax.f32 %v129_v12, 0.0  ;;  %v191_v16 = vpop.f32.mrb[3].mxu0 }
  0xed   :  { %v135_v17 = vpack.c.bf16 %v134_v15, %v134_v15 }
  0xef   :  { %136 = vst [vmem:[%s251_s3] sm:$0xf] %v135_v17 }

// kernel: forward.23
= control target key start
LH: loop header
LB: loop body
LE: loop exit
PB: predicated region body
PF: predicated region fallthrough
CT: control target
= control target key end

     0   :  { %v229_v0 = vmov 0   ;;  %vm128_vm0 = vcmask 130048   ;;  %s286_s0 = inlined_call_operand.vmem [shape: bf16[144,128], index: 0, kind: input, shape index: {}]   ;;  %s287_s1 = inlined_call_operand.vmem [shape: bf16[1,8,144], index: 1, kind: input, shape index: {}]   ;;  %s288_s2 = inlined_call_operand.vmem [shape: f32[1,8,1], index: 2, kind: input, shape index: {}]   ;;  %s289_s3 = inlined_call_operand.vmem [shape: bf16[8,128], index: 3, kind: output, shape index: {}]  }
   0x1   :  { %132 = vmatprep.subr.bf16.mxu0 %v229_v0  ;;  %v218_v1 = vld [vmem:[%s286_s0] sm:$0xff]   ;;  %217 = vset.pattern.permute.xlu0 %v229_v0  ;;  %v219_v2 = vld [vmem:[%s286_s0 + $0x8] sm:$0xff]   ;;  %v220_v3 = vld [vmem:[%s286_s0 + $0x10] sm:$0xff]  }
   0x2   :  { %133 = vmatpush1.bf16.msra.mxu0 %v218_v1  ;;  %v43_v4 = vld [vmem:[%s287_s1] sm:$0xff]  ;;  %v221_v6 = vld [vmem:[%s286_s0 + $0x18] sm:$0xff]   ;;  %v223_v9 = vld [vmem:[%s286_s0 + $0x28] sm:$0xff]  }
   0x3   :  { %134 = vmatprep.subr.bf16.mxu0 %v229_v0  ;;  %v62_v5 = vld [vmem:[%s288_s2] sm:$0xff]  ;;  %v205_v7 = vcombine.high %v43_v4, %v43_v4  ;;  %v224_v10 = vld [vmem:[%s286_s0 + $0x30] sm:$0xff]   ;;  %v225_v11 = vld [vmem:[%s286_s0 + $0x38] sm:$0xff]   ;;  %v204_v13 = vcombine.low %v43_v4, %v43_v4 }
   0x4   :  { %65 = vperm.xlu0 %217, %v62_v5   ;;  %v222_v8 = vld [vmem:[%s286_s0 + $0x20] sm:$0xff]  }
   0x5   :  { %215 = vmatprep.mubr.msk.bf16.mxu0 %vm128_vm0, %v205_v7  ;;  %v226_v12 = vld [vmem:[%s286_s0 + $0x40] sm:$0xff]  }
   0x6   :  { %135 = vmatpush1.bf16.msra.mxu0 %v219_v2 }
   0x7   :  { %136 = vmatprep.subr.bf16.mxu0 %v229_v0 }
   0xa   :  { %137 = vmatpush1.bf16.msra.mxu0 %v220_v3 }
   0xb   :  { %138 = vmatprep.subr.bf16.mxu0 %v229_v0 }
   0xe   :  { %139 = vmatpush1.bf16.msra.mxu0 %v221_v6 }
   0xf   :  { %140 = vmatprep.subr.bf16.mxu0 %v229_v0 }
  0x12   :  { %141 = vmatpush1.bf16.msra.mxu0 %v222_v8 }
  0x13   :  { %142 = vmatprep.subr.bf16.mxu0 %v229_v0 }
  0x16   :  { %143 = vmatpush1.bf16.msra.mxu0 %v223_v9 }
  0x17   :  { %144 = vmatprep.subr.bf16.mxu0 %v229_v0 }
  0x1a   :  { %145 = vmatpush1.bf16.msra.mxu0 %v224_v10 }
  0x1b   :  { %146 = vmatprep.subr.bf16.mxu0 %v229_v0 }
  0x1e   :  { %147 = vmatpush1.bf16.msra.mxu0 %v225_v11 }
  0x1f   :  { %148 = vmatprep.subr.bf16.mxu0 %v229_v0 }
  0x22   :  { %149 = vmatpush1.bf16.msra.mxu0 %v226_v12 }
  0x25   :  { %165 = vmatmul.mubr.bf16.vlgmr.msra.gmra.mrb[0].mxu0 %v204_v13 }
  0x83   :  { %v66_v14 = vpop.permute.xlu0 %65 }
  0xf8   :  { %v166_v15 = vpop.f32.mrb[0].mxu0 }
  0xf9   :  { %v167_v16 = vadd.f32 %v166_v15, %v66_v14  ;;  %v168_v17 = vpop.f32.mrb[1].mxu0 }
  0xfa   :  { %v169_v18 = vpop.f32.mrb[2].mxu0 }
  0xfb   :  { %v172_v19 = vmax.f32 %v167_v16, 0.0  ;;  %v170_v20 = vpop.f32.mrb[3].mxu0 }
  0xfd   :  { %v173_v21 = vpack.c.bf16 %v172_v19, %v172_v19 }
  0xff   :  { %174 = vst [vmem:[%s289_s3] sm:$0xf] %v173_v21 }

// kernel: forward.25
= control target key start
LH: loop header
LB: loop body
LE: loop exit
PB: predicated region body
PF: predicated region fallthrough
CT: control target
= control target key end

     0   :  { %v272_v0 = vmov 0   ;;  %vm106_vm0 = vcmask 130048   ;;  %v273_v15 = vmov 0.0   ;;  %vm274_vm1 = vmmov 0   ;;  %s347_s0 = inlined_call_operand.vmem [shape: bf16[144,128], index: 0, kind: input, shape index: {}]   ;;  %s348_s1 = inlined_call_operand.vmem [shape: bf16[8,144], index: 1, kind: input, shape index: {}]   ;;  %s349_s2 = inlined_call_operand.vmem [shape: f32[8,1], index: 2, kind: input, shape index: {}, may-alias: {2,4}]   ;;  %s350_s4 = inlined_call_operand.vmem [shape: f32[8,1], index: 4, kind: input, shape index: {}, may-alias: {2,4}]   ;;  %s351_s3 = inlined_call_operand.vmem [shape: f32[8,8], index: 3, kind: input, shape index: {}]   ;;  %s352_s5 = inlined_call_operand.vmem [shape: f32[8,128], index: 5, kind: output, shape index: {}]  }
   0x1   :  { %110 = vmatprep.subr.bf16.mxu0 %v272_v0  ;;  %v261_v1 = vld [vmem:[%s347_s0] sm:$0xff]   ;;  %260 = vset.pattern.permute.xlu0 %v272_v0  ;;  %v262_v2 = vld [vmem:[%s347_s0 + $0x8] sm:$0xff]   ;;  %v263_v3 = vld [vmem:[%s347_s0 + $0x10] sm:$0xff]   ;;  %vm158_vm2 = vcmask 64512  }
   0x2   :  { %111 = vmatpush1.bf16.msra.mxu0 %v261_v1  ;;  %v21_v4 = vld [vmem:[%s348_s1] sm:$0xff]  ;;  %v264_v6 = vld [vmem:[%s347_s0 + $0x18] sm:$0xff]   ;;  %v266_v10 = vld [vmem:[%s347_s0 + $0x28] sm:$0xff]   ;;  %252 = vmatprep.subr.mxu1 %v273_v15 }
   0x3   :  { %112 = vmatprep.subr.bf16.mxu0 %v272_v0  ;;  %v40_v5 = vld [vmem:[%s349_s2] sm:$0xff]  ;;  %v238_v7 = vcombine.high %v21_v4, %v21_v4  ;;  %v267_v11 = vld [vmem:[%s347_s0 + $0x30] sm:$0xff]   ;;  %v268_v12 = vld [vmem:[%s347_s0 + $0x38] sm:$0xff]   ;;  %v237_v14 = vcombine.low %v21_v4, %v21_v4  ;;  %254 = vmatprep.mubr.msk.f32.mxu1 %vm274_vm1, %v273_v15 }
   0x4   :  { %43 = vperm.xlu0 %260, %v40_v5   ;;  %v152_v8 = vld [vmem:[%s350_s4] sm:$0xff] }
   0x5   :  { %248 = vmatprep.mubr.msk.bf16.mxu0 %vm106_vm0, %v238_v7  ;;  %v265_v9 = vld [vmem:[%s347_s0 + $0x20] sm:$0xff]  }
   0x6   :  { %113 = vmatpush1.bf16.msra.mxu0 %v262_v2  ;;  %v269_v13 = vld [vmem:[%s347_s0 + $0x40] sm:$0xff]  }
   0x7   :  { %114 = vmatprep.subr.bf16.mxu0 %v272_v0  ;;  %v151_v23 = vld [vmem:[%s351_s3] sm:$0xff] }
   0x8   :  { %155 = vperm.xlu0 %260, %v152_v8  }
   0xa   :  { %115 = vmatpush1.bf16.msra.mxu0 %v263_v3 }
   0xb   :  { %116 = vmatprep.subr.bf16.mxu0 %v272_v0 }
   0xe   :  { %117 = vmatpush1.bf16.msra.mxu0 %v264_v6 }
   0xf   :  { %118 = vmatprep.subr.bf16.mxu0 %v272_v0 }
  0x12   :  { %119 = vmatpush1.bf16.msra.mxu0 %v265_v9 }
  0x13   :  { %120 = vmatprep.subr.bf16.mxu0 %v272_v0 }
  0x16   :  { %121 = vmatpush1.bf16.msra.mxu0 %v266_v10 }
  0x17   :  { %122 = vmatprep.subr.bf16.mxu0 %v272_v0 }
  0x1a   :  { %123 = vmatpush1.bf16.msra.mxu0 %v267_v11 }
  0x1b   :  { %124 = vmatprep.subr.bf16.mxu0 %v272_v0 }
  0x1e   :  { %125 = vmatpush1.bf16.msra.mxu0 %v268_v12 }
  0x1f   :  { %126 = vmatprep.subr.bf16.mxu0 %v272_v0 }
  0x22   :  { %127 = vmatpush1.bf16.msra.mxu0 %v269_v13 }
  0x25   :  { %143 = vmatmul.mubr.bf16.vlgmr.msra.gmra.mrb[0].mxu0 %v237_v14 }
  0x83   :  { %v44_v16 = vpop.permute.xlu0 %43 }
  0x87   :  { %v156_v24 = vpop.permute.xlu0 %155 }
  0xf8   :  { %v144_v17 = vpop.f32.mrb[0].mxu0 }
  0xf9   :  { %v145_v18 = vadd.f32 %v144_v17, %v44_v16  ;;  %v146_v19 = vpop.f32.mrb[1].mxu0 }
  0xfa   :  { %v147_v20 = vpop.f32.mrb[2].mxu0 }
  0xfb   :  { %v150_v21 = vmax.f32 %v145_v18, 0.0  ;;  %v148_v22 = vpop.f32.mrb[3].mxu0 }
  0xfd   :  { %253 = vmatpush3.msra.mxu1 %v150_v21 }
  0xfe   :  { %255 = vmatmul.mubr.msk.f32.vlgmr.msra.gmra.mrb[0].mxu1 %vm158_vm2, %v151_v23 }
 0x1d1   :  { %v228_v25 = vpop.f32.mrb[0].mxu1 }
 0x1d2   :  { %v229_v26 = vadd.f32 %v228_v25, %v156_v24  ;;  %v256_v27 = vpop.f32.mrb[1].mxu1 }
 0x1d4   :  { %232 = vst [vmem:[%s352_s5] sm:$0xff] %v229_v26 }

</bundles_post_ra>
